<compile_context>
chip_gen: v6e
topology: v6e:2x2x1
jax: 0.10.0
libtpu: 0.0.40
codegen_flags: <defaults>
</compile_context>

<pallas_src>
import jax
import jax.numpy as jnp
from jax.experimental import pallas as pl
from jax.experimental.pallas import tpu as pltpu


def _round_up(x, m):
    return ((x + m - 1) // m) * m


# ----------------------------- Pallas kernel --------------------------------

def make_kernel(in_dim, hidden, out_lane, row_offs):
    h4 = 4 * hidden
    r_enc, r_h1, r_h2, r_d1h, r_d1b, r_d2 = row_offs
    OFF_GENDER = 6  # gender column inside the packed head block (age occupies 0..5)

    def kernel(x_ref, w_ref, b_ref, out_ref):
        x = x_ref[...]                                        # (TB, in_dim)

        # Static slices of the packed weight / bias slabs (layout plumbing).
        w_enc = w_ref[r_enc:r_enc + in_dim, 0:hidden]
        w_h1  = w_ref[r_h1:r_h1 + hidden, 0:h4]
        w_h2  = w_ref[r_h2:r_h2 + h4, 0:out_lane]             # block-diag, 128-lane padded
        w_d1h = w_ref[r_d1h:r_d1h + hidden, 0:hidden]
        w_d1b = w_ref[r_d1b:r_d1b + out_lane, 0:hidden]       # head rows padded to 128
        w_d2  = w_ref[r_d2:r_d2 + hidden, 0:out_lane]         # disease cols padded to 128

        b_enc = b_ref[0:1, 0:hidden]
        b_h1  = b_ref[1:2, 0:h4]
        b_h2  = b_ref[2:3, 0:out_lane]
        b_d1  = b_ref[3:4, 0:hidden]
        b_d2  = b_ref[4:5, 0:out_lane]

        # Masked encoder (mask already folded into w_enc host-side).
        h = jnp.dot(x, w_enc, preferred_element_type=jnp.float32) + b_enc

        # Four head layer-1 matmuls fused into one 128-lane MXU push + one ReLU.
        z = jnp.maximum(
            jnp.dot(h, w_h1, preferred_element_type=jnp.float32) + b_h1, 0.0)

        # Four head layer-2 matmuls fused into one block-diagonal push, already
        # laid out in the final 128-lane output columns (zeros beyond head_out).
        heads = jnp.dot(z, w_h2, preferred_element_type=jnp.float32) + b_h2
        # Sigmoid only on the gender column (other heads are linear).
        col = jax.lax.broadcasted_iota(jnp.int32, heads.shape, 1)
        heads = jnp.where(col == OFF_GENDER, jax.nn.sigmoid(heads), heads)

        # Disease decoder on concat((h, age, gender, bmi, bodysite)):
        # implemented as two pushes -> no lane concat in VMEM.
        d1 = jnp.maximum(
            jnp.dot(h, w_d1h, preferred_element_type=jnp.float32)
            + jnp.dot(heads, w_d1b, preferred_element_type=jnp.float32)
            + b_d1, 0.0)
        disease = jnp.dot(d1, w_d2, preferred_element_type=jnp.float32) + b_d2

        # Single lane-dense unmasked output store (disjoint non-zero columns).
        out_ref[...] = heads + disease

    return kernel


# ----------------------------- Wrapper ---------------------------------------

def microkpnn_forward(x, w_slab, b_slab, *, in_dim, hidden, bodysite_num,
                      disease_num, row_offs, batch_tile=128):
    B = x.shape[0]
    head_out = 11 + bodysite_num
    out_lane = _round_up(head_out + disease_num, 128)
    tb = min(batch_tile, B)
    assert B % tb == 0 and tb % 8 == 0, (B, tb)

    kernel = make_kernel(in_dim, hidden, out_lane, row_offs)

    packed = pl.pallas_call(
        kernel,
        out_shape=jax.ShapeDtypeStruct((B, out_lane), jnp.float32),
        grid_spec=pltpu.PrefetchScalarGridSpec(
            num_scalar_prefetch=0,
            grid=(B // tb,),
            in_specs=[
                pl.BlockSpec((tb, in_dim), lambda i: (i, 0)),   # activations: batch-tiled
                pl.BlockSpec(w_slab.shape, lambda i: (0, 0)),   # weight slab: resident
                pl.BlockSpec(b_slab.shape, lambda i: (0, 0)),   # bias slab:   resident
            ],
            out_specs=pl.BlockSpec((tb, out_lane), lambda i: (i, 0)),
        ),
        compiler_params=pltpu.CompilerParams(
            dimension_semantics=("parallel",)),
    )(x, w_slab, b_slab)

    age      = packed[:, 0:6]
    gender   = packed[:, 6:7]
    bmi      = packed[:, 7:11]
    bodysite = packed[:, 11:11 + bodysite_num]
    disease  = packed[:, head_out:head_out + disease_num]
    return age, gender, bmi, bodysite, disease


# ----------------------------- Parameter setup -------------------------------

def _xavier_normal(key, fan_in, fan_out):
    std = jnp.sqrt(2.0 / (fan_in + fan_out))
    return jax.random.normal(key, (fan_in, fan_out), jnp.float32) * std  # (in, out)


def _bias(key, fan_in, out_dim):
    bound = 1.0 / jnp.sqrt(jnp.float32(fan_in))
    return jax.random.uniform(key, (1, out_dim), jnp.float32, -bound, bound)


def make_params(key, in_dim, hidden, bodysite_num, disease_num):
    keys = jax.random.split(key, 32)
    ki = iter(range(32))

    # mask (in_dim, hidden) permuted -> (out, in); True positions zeroed (MaskedLinear).
    mask_T = jax.random.bernoulli(keys[next(ki)], 0.5, (hidden, in_dim))
    w1_oi = _xavier_normal(keys[next(ki)], in_dim, hidden).T
    w1_oi = jnp.where(mask_T, 0.0, w1_oi)
    w1 = w1_oi.T                                             # (in, out)
    b1 = _bias(keys[next(ki)], in_dim, hidden)

    def head_params(out_dim):
        w_1 = _xavier_normal(keys[next(ki)], hidden, hidden)
        b_1 = _bias(keys[next(ki)], hidden, hidden)
        w_2 = _xavier_normal(keys[next(ki)], hidden, out_dim)
        b_2 = _bias(keys[next(ki)], hidden, out_dim)
        return w_1, b_1, w_2, b_2

    age_p      = head_params(6)
    gender_p   = head_params(1)
    bmi_p      = head_params(4)
    bodysite_p = head_params(bodysite_num)

    dis_in = hidden + bodysite_num + 11
    wd1 = _xavier_normal(keys[next(ki)], dis_in, hidden)
    bd1 = _bias(keys[next(ki)], dis_in, hidden)
    wd2 = _xavier_normal(keys[next(ki)], hidden, disease_num)
    bd2 = _bias(keys[next(ki)], hidden, disease_num)

    return dict(w1=w1, b1=b1, age=age_p, gender=gender_p, bmi=bmi_p,
                bodysite=bodysite_p, wd1=wd1, bd1=bd1, wd2=wd2, bd2=bd2)


def pack_params(p, in_dim, hidden, bodysite_num, disease_num):
    """Pack all parameters into one weight slab and one bias slab (lane-dense)."""
    head_out = 11 + bodysite_num
    h4 = 4 * hidden
    out_lane = _round_up(head_out + disease_num, 128)

    wa1, ba1, wa2, ba2 = p["age"]
    wg1, bg1, wg2, bg2 = p["gender"]
    wb1, bb1, wb2, bb2 = p["bmi"]
    ws1, bs1, ws2, bs2 = p["bodysite"]

    # Head layer-1 weights stacked along N (columns: age | gender | bmi | bodysite).
    w_h1 = jnp.concatenate([wa1, wg1, wb1, ws1], axis=1)     # (hidden, 4*hidden)
    b_h1 = jnp.concatenate([ba1, bg1, bb1, bs1], axis=1)

    # Head layer-2 as one block-diagonal matrix, padded to the 128-lane output.
    w_h2 = jnp.zeros((h4, out_lane), jnp.float32)
    w_h2 = w_h2.at[0 * hidden:1 * hidden, 0:6].set(wa2)
    w_h2 = w_h2.at[1 * hidden:2 * hidden, 6:7].set(wg2)
    w_h2 = w_h2.at[2 * hidden:3 * hidden, 7:11].set(wb2)
    w_h2 = w_h2.at[3 * hidden:4 * hidden, 11:head_out].set(ws2)
    b_h2 = jnp.zeros((1, out_lane), jnp.float32)
    b_h2 = b_h2.at[:, 0:head_out].set(
        jnp.concatenate([ba2, bg2, bb2, bs2], axis=1))

    # Disease L1 split: x-part (hidden rows) and head-part (rows padded to 128
    # so it contracts directly against the 128-lane packed `heads`).
    w_d1h = p["wd1"][:hidden, :]                              # (hidden, hidden)
    w_d1b = jnp.zeros((out_lane, hidden), jnp.float32)
    w_d1b = w_d1b.at[0:head_out, :].set(p["wd1"][hidden:, :])
    b_d1 = p["bd1"]

    # Disease L2 padded into the final output columns [head_out : head_out+dn).
    w_d2 = jnp.zeros((hidden, out_lane), jnp.float32)
    w_d2 = w_d2.at[:, head_out:head_out + disease_num].set(p["wd2"])
    b_d2 = jnp.zeros((1, out_lane), jnp.float32)
    b_d2 = b_d2.at[:, head_out:head_out + disease_num].set(p["bd2"])

    blocks = [
        (p["w1"], p["b1"]),      # encoder
        (w_h1, b_h1),            # fused head L1
        (w_h2, b_h2),            # fused head L2 (block-diagonal, output-laned)
        (w_d1h, b_d1),           # disease L1 (x part)
        (w_d1b, None),           # disease L1 (head part, 128-row padded)
        (w_d2, b_d2),            # disease L2 (output-laned)
    ]

    lane = _round_up(max(max(w.shape[1] for w, _ in blocks), 128), 128)
    row_offs, r = [], 0
    for w, _ in blocks:
        row_offs.append(r)
        r = _round_up(r + w.shape[0], 8)     # keep every block sublane-aligned
    total_rows = _round_up(r, 8)

    w_slab = jnp.zeros((total_rows, lane), jnp.float32)
    b_slab = jnp.zeros((8, lane), jnp.float32)
    bias_row = 0
    for (w, b), off in zip(blocks, row_offs):
        w_slab = w_slab.at[off:off + w.shape[0], 0:w.shape[1]].set(w)
        if b is not None:
            b_slab = b_slab.at[bias_row:bias_row + 1, 0:b.shape[1]].set(b)
            bias_row += 1
    return w_slab, b_slab, tuple(row_offs)


# ----------------------------- Reference (plain JAX) -------------------------

def microkpnn_reference(x, p):
    h = x @ p["w1"] + p["b1"]

    def head(prm):
        w_1, b_1, w_2, b_2 = prm
        return jnp.maximum(h @ w_1 + b_1, 0.0) @ w_2 + b_2

    age = head(p["age"])
    gender = jax.nn.sigmoid(head(p["gender"]))
    bmi = head(p["bmi"])
    bodysite = head(p["bodysite"])
    cat = jnp.concatenate([h, age, gender, bmi, bodysite], axis=1)
    disease = jnp.maximum(cat @ p["wd1"] + p["bd1"], 0.0) @ p["wd2"] + p["bd2"]
    return age, gender, bmi, bodysite, disease


# ----------------------------- Main -------------------------------------------

if __name__ == "__main__":
    B, IN_DIM, HIDDEN_DIM = 256, 16, 32
    BODYSITE_NUM, DISEASE_NUM = 5, 8
    BATCH_TILE = 128

    key = jax.random.PRNGKey(0)
    kx, kp = jax.random.split(key)
    x = jax.random.uniform(kx, (B, IN_DIM), jnp.float32)

    params = make_params(kp, IN_DIM, HIDDEN_DIM, BODYSITE_NUM, DISEASE_NUM)
    w_slab, b_slab, row_offs = pack_params(params, IN_DIM, HIDDEN_DIM,
                                           BODYSITE_NUM, DISEASE_NUM)

    outs = microkpnn_forward(x, w_slab, b_slab,
                             in_dim=IN_DIM, hidden=HIDDEN_DIM,
                             bodysite_num=BODYSITE_NUM, disease_num=DISEASE_NUM,
                             row_offs=row_offs, batch_tile=BATCH_TILE)
    outs = jax.block_until_ready(outs)

    refs = microkpnn_reference(x, params)
    for o, r in zip(outs, refs):
        assert o.shape == r.shape, (o.shape, r.shape)
        err = float(jnp.max(jnp.abs(o - r)))
        assert jnp.allclose(o, r, atol=2e-5, rtol=2e-5), err

    print("KERNEL_OK")
</pallas_src>

<mosaic_0001>
module attributes {stable_mosaic.version = 11 : i64} {
  func.func @kernel(%arg0: i32, %arg1: memref<128x16xf32, #tpu.memory_space<vmem>>, %arg2: memref<368x128xf32, #tpu.memory_space<vmem>>, %arg3: memref<8x128xf32, #tpu.memory_space<vmem>>, %arg4: memref<128x128xf32, #tpu.memory_space<vmem>>) attributes {dimension_semantics = [#tpu.dimension_semantics<parallel>], iteration_bounds = array<i64: 2>, scalar_prefetch = 0 : i64, scratch_operands = 0 : i64, tpu.core_type = #tpu.core_type<tc>, window_params = [{transform_indices = @transform_0, window_bounds = array<i64: 128, 16>}, {pipeline_mode = #tpu.pipeline_mode<synchronous>, transform_indices = @transform_1, window_bounds = array<i64: 368, 128>}, {pipeline_mode = #tpu.pipeline_mode<synchronous>, transform_indices = @transform_2, window_bounds = array<i64: 8, 128>}, {transform_indices = @transform_3, window_bounds = array<i64: 128, 128>}]} {
    %c0 = arith.constant 0 : index
    %c0_0 = arith.constant 0 : index
    %0 = vector.load %arg1[%c0, %c0_0] : memref<128x16xf32, #tpu.memory_space<vmem>>, vector<128x16xf32>
    %c0_1 = arith.constant 0 : index
    %c0_2 = arith.constant 0 : index
    %1 = vector.load %arg2[%c0_1, %c0_2] : memref<368x128xf32, #tpu.memory_space<vmem>>, vector<16x32xf32>
    %c16 = arith.constant 16 : index
    %c0_3 = arith.constant 0 : index
    %2 = vector.load %arg2[%c16, %c0_3] : memref<368x128xf32, #tpu.memory_space<vmem>>, vector<32x128xf32>
    %c48 = arith.constant 48 : index
    %c0_4 = arith.constant 0 : index
    %3 = vector.load %arg2[%c48, %c0_4] : memref<368x128xf32, #tpu.memory_space<vmem>>, vector<128x128xf32>
    %c176 = arith.constant 176 : index
    %c0_5 = arith.constant 0 : index
    %4 = vector.load %arg2[%c176, %c0_5] : memref<368x128xf32, #tpu.memory_space<vmem>>, vector<32x32xf32>
    %c208 = arith.constant 208 : index
    %c0_6 = arith.constant 0 : index
    %5 = vector.load %arg2[%c208, %c0_6] : memref<368x128xf32, #tpu.memory_space<vmem>>, vector<128x32xf32>
    %c336 = arith.constant 336 : index
    %c0_7 = arith.constant 0 : index
    %6 = vector.load %arg2[%c336, %c0_7] : memref<368x128xf32, #tpu.memory_space<vmem>>, vector<32x128xf32>
    %c0_8 = arith.constant 0 : index
    %c0_9 = arith.constant 0 : index
    %7 = vector.load %arg3[%c0_8, %c0_9] : memref<8x128xf32, #tpu.memory_space<vmem>>, vector<1x32xf32>
    %c1 = arith.constant 1 : index
    %c0_10 = arith.constant 0 : index
    %8 = vector.load %arg3[%c1, %c0_10] : memref<8x128xf32, #tpu.memory_space<vmem>>, vector<1x128xf32>
    %c2 = arith.constant 2 : index
    %c0_11 = arith.constant 0 : index
    %9 = vector.load %arg3[%c2, %c0_11] : memref<8x128xf32, #tpu.memory_space<vmem>>, vector<1x128xf32>
    %c3 = arith.constant 3 : index
    %c0_12 = arith.constant 0 : index
    %10 = vector.load %arg3[%c3, %c0_12] : memref<8x128xf32, #tpu.memory_space<vmem>>, vector<1x32xf32>
    %c4 = arith.constant 4 : index
    %c0_13 = arith.constant 0 : index
    %11 = vector.load %arg3[%c4, %c0_13] : memref<8x128xf32, #tpu.memory_space<vmem>>, vector<1x128xf32>
    %cst = arith.constant dense<0.000000e+00> : vector<128x32xf32>
    %12 = tpu.matmul %0, %1, %cst {dimension_numbers = #tpu.dot_dimension_numbers<[1], [0], [0], [1], [0, 0, 1, 1], [], []>} : vector<128x16xf32>, vector<16x32xf32>, vector<128x32xf32> -> vector<128x32xf32>
    %13 = vector.broadcast %7 : vector<1x32xf32> to vector<128x32xf32>
    %14 = arith.addf %12, %13 : vector<128x32xf32>
    %cst_14 = arith.constant dense<0.000000e+00> : vector<128x128xf32>
    %15 = tpu.matmul %14, %2, %cst_14 {dimension_numbers = #tpu.dot_dimension_numbers<[1], [0], [0], [1], [0, 0, 1, 1], [], []>} : vector<128x32xf32>, vector<32x128xf32>, vector<128x128xf32> -> vector<128x128xf32>
    %16 = vector.broadcast %8 : vector<1x128xf32> to vector<128x128xf32>
    %17 = arith.addf %15, %16 : vector<128x128xf32>
    %cst_15 = arith.constant 0.000000e+00 : f32
    %18 = vector.broadcast %cst_15 : f32 to vector<128x128xf32>
    %19 = arith.maximumf %17, %18 : vector<128x128xf32>
    %cst_16 = arith.constant dense<0.000000e+00> : vector<128x128xf32>
    %20 = tpu.matmul %19, %3, %cst_16 {dimension_numbers = #tpu.dot_dimension_numbers<[1], [0], [0], [1], [0, 0, 1, 1], [], []>} : vector<128x128xf32>, vector<128x128xf32>, vector<128x128xf32> -> vector<128x128xf32>
    %21 = vector.broadcast %9 : vector<1x128xf32> to vector<128x128xf32>
    %22 = arith.addf %20, %21 : vector<128x128xf32>
    %23 = tpu.iota {dimensions = array<i32: 1>} : vector<128x128xi32>
    %c6_i32 = arith.constant 6 : i32
    %24 = vector.broadcast %c6_i32 : i32 to vector<128x128xi32>
    %25 = arith.cmpi eq, %23, %24 : vector<128x128xi32>
    %26 = arith.negf %22 : vector<128x128xf32>
    %27 = math.exp %26 : vector<128x128xf32>
    %cst_17 = arith.constant 1.000000e+00 : f32
    %28 = vector.broadcast %cst_17 : f32 to vector<128x128xf32>
    %29 = arith.addf %28, %27 : vector<128x128xf32>
    %30 = arith.divf %28, %29 : vector<128x128xf32>
    %31 = arith.select %25, %30, %22 : vector<128x128xi1>, vector<128x128xf32>
    %cst_18 = arith.constant dense<0.000000e+00> : vector<128x32xf32>
    %32 = tpu.matmul %14, %4, %cst_18 {dimension_numbers = #tpu.dot_dimension_numbers<[1], [0], [0], [1], [0, 0, 1, 1], [], []>} : vector<128x32xf32>, vector<32x32xf32>, vector<128x32xf32> -> vector<128x32xf32>
    %cst_19 = arith.constant dense<0.000000e+00> : vector<128x32xf32>
    %33 = tpu.matmul %31, %5, %cst_19 {dimension_numbers = #tpu.dot_dimension_numbers<[1], [0], [0], [1], [0, 0, 1, 1], [], []>} : vector<128x128xf32>, vector<128x32xf32>, vector<128x32xf32> -> vector<128x32xf32>
    %34 = arith.addf %32, %33 : vector<128x32xf32>
    %35 = vector.broadcast %10 : vector<1x32xf32> to vector<128x32xf32>
    %36 = arith.addf %34, %35 : vector<128x32xf32>
    %cst_20 = arith.constant 0.000000e+00 : f32
    %37 = vector.broadcast %cst_20 : f32 to vector<128x32xf32>
    %38 = arith.maximumf %36, %37 : vector<128x32xf32>
    %cst_21 = arith.constant dense<0.000000e+00> : vector<128x128xf32>
    %39 = tpu.matmul %38, %6, %cst_21 {dimension_numbers = #tpu.dot_dimension_numbers<[1], [0], [0], [1], [0, 0, 1, 1], [], []>} : vector<128x32xf32>, vector<32x128xf32>, vector<128x128xf32> -> vector<128x128xf32>
    %40 = vector.broadcast %11 : vector<1x128xf32> to vector<128x128xf32>
    %41 = arith.addf %39, %40 : vector<128x128xf32>
    %42 = arith.addf %31, %41 : vector<128x128xf32>
    %c0_22 = arith.constant 0 : index
    %c0_23 = arith.constant 0 : index
    %43 = vector.load %arg4[%c0_22, %c0_23] : memref<128x128xf32, #tpu.memory_space<vmem>>, vector<128x128xf32>
    tpu.vector_store %arg4[%c0_22, %c0_23], %42 {strides = array<i32>} : memref<128x128xf32, #tpu.memory_space<vmem>>, vector<128x128xf32>,
    return
  }
  func.func @transform_0(%arg0: i32) -> (i32, i32) {
    %c0_i32 = arith.constant 0 : i32
    %c0_i32_0 = arith.constant 0 : i32
    return %arg0, %c0_i32 : i32, i32
  }
  func.func @transform_1(%arg0: i32) -> (i32, i32) {
    %c0_i32 = arith.constant 0 : i32
    %c0_i32_0 = arith.constant 0 : i32
    %c0_i32_1 = arith.constant 0 : i32
    return %c0_i32, %c0_i32_0 : i32, i32
  }
  func.func @transform_2(%arg0: i32) -> (i32, i32) {
    %c0_i32 = arith.constant 0 : i32
    %c0_i32_0 = arith.constant 0 : i32
    %c0_i32_1 = arith.constant 0 : i32
    return %c0_i32, %c0_i32_0 : i32, i32
  }
  func.func @transform_3(%arg0: i32) -> (i32, i32) {
    %c0_i32 = arith.constant 0 : i32
    %c0_i32_0 = arith.constant 0 : i32
    return %arg0, %c0_i32 : i32, i32
  }
}

</mosaic_0001>

<bundles_post_ra>
// kernel: tpu_custom_call.1
= control target key start
LH: loop header
LB: loop body
LE: loop exit
PB: predicated region body
PF: predicated region fallthrough
CT: control target
= control target key end

     0   :  { %8 = vsyncpa [#allocation3], 0  ;;  %s2829_s0 = inlined_call_operand.vmem [shape: f32[256,16], index: 0, kind: input, shape index: {}]   ;;  %s2830_s1 = inlined_call_operand.hbm [shape: f32[368,128], index: 1, kind: input, shape index: {}]   ;;  %s2831_s2 = inlined_call_operand.vmem [shape: f32[8,128], index: 2, kind: input, shape index: {}]   ;;  %s2832_s3 = inlined_call_operand.hbm [shape: f32[256,128], index: 3, kind: output, shape index: {}]  }
   0x1   :  { %9 = vsyncpa [#allocation4], 0 }
   0x2   :  { %11 = vsyncpa [#allocation4 + $0x1], 0  ;;  %s2287_s12 = smov 0   ;;  %s2289_s13 = smov 0  }
   0x3   :  { %s2291_s14 = smov 0   ;;  %s2293_s15 = smov 0  }
   0x4 LB: > { %s2308_s16 = sadd.s32 4294967295, %s2259_s15   ;;  %s1573_s17 = sadd.s32 4294967294, %s2259_s15   ;;  %s2259_s15 = sphi %s2293_s15, %s2840_s15   ;;  %s2255_s14 = sphi %s2291_s14, %s2839_s14   ;;  %s2251_s13 = sphi %s2289_s13, %s2838_s13   ;;  %s2247_s12 = sphi %s2287_s12, %s2837_s12  }
   0x5   : > { %s2312_s18 = sadd.s32 1, %s2259_s15   ;;  %s92_s19 = sadd.s32 1, %s2255_s14 }
   0x6   : > { %s89_s20 = ssub.s32 %s2259_s15, %s2312_s18  ;;  %p102_p0 = scmp.ne.s32.totalorder %s2255_s14, %s2251_s13 }
   0x7   : > { %p90_p1 = scmp.eq.s32.totalorder %s89_s20, 0  ;;  %p103_p2 = scmp.eq.s32.totalorder %s2308_s16, 1 }
   0x8   : > { %p108_p3 = scmp.ne.s32.totalorder %s2251_s13, %s2247_s12  ;;  %p109_p4 = scmp.eq.s32.totalorder %s1573_s17, 1 }
   0x9   : > { %s2323_s21 = scalar_select %p90_p1, %s2255_s14, %s92_s19  }
   0xa   : > { %p2325_p5 = por %p103_p2, %p102_p0  ;;  %p2329_p6 = por %p109_p4, %p108_p3 }
   0xb   : > { %p1574_p7 = scmp.ge.s32.totalorder %s2259_s15, 1  ;;  %p116_p8 = scmp.lt.s32.totalorder %s2259_s15, 3 }
   0xc   : > { %s2834_s23 = scalar_select %p2329_p6, 1, 0 }
   0xd   : > { %p2065_p9 = scmp.eq.s32.totalorder %s2308_s16, 0  ;;  %p2336_p10 = pnand %p1574_p7, %p116_p8 }
   0xe   : > { %s2261_s25 = smov [#allocation2]  }
   0xf   : > { %s128_s26 = sshll.u32 %s2261_s25, 4  ;;  %p2057_p11 = pneg %p2336_p10  ;;  %s129_s26 = int_to_ptr.vmem [resolvable:$true] %s128_s26 }
  0x10   : > { %s2180_s27 = scalar_lea.vmem %s129_s26, 5888  ;;  %p2188_p3 = scmp.lt.s32.totalorder %s129_s26, %s129_s26 }
  0x11   : > { %p2058_p12 = pnand %p2065_p9, %p2057_p11  ;;  %p2181_p0 = scmp.ne.s32.totalorder %s129_s26, %s2180_s27 }
  0x12   : > { %p2189_p4 = scmp.lt.s32.totalorder %s2180_s27, %s2180_s27 }
  0x13   : > { %p2171_p13 = pneg %p2058_p12 }
  0x14   : > { %p2190_p6 = por %p2189_p4, %p2188_p3 }
  0x15   : > { %p2183_p1 = pnand %p2181_p0, %p2171_p13 }
  0x17   : > { %p2184_p2 = pneg %p2183_p1 }
  0x19   : > { %p2191_p7 = pnand %p2190_p6, %p2184_p2 }
  0x1b   : > { %2194 = shalt.err (!%p2191_p7)
}
  0x1c   : > { %s2262_s28 = smov 128   ;;  %s2263_s29 = smov 8  }
  0x1d   : > { %2060 = dma.hbm_to_vmem [thread:$0]  (!%p2058_p12), %s2830_s1, 5888, %s129_s26, [#allocation3], %s2262_s28, %s2262_s28, %s2263_s29  }
  0x1e   : > { %156 = sbr.rel (%p2336_p10) target bundleno = 1117 (0x45d), region = 32 }
  0x23   : > { %2238 = dma.done.wait (%p2065_p9), [#allocation3], 5888  }
  0x24   : > { %2240 = vsyncadd (%p2065_p9), [#allocation3], 4294961408  ;;  %s1580_s5 = sshll.u32 %s2308_s16, 4  ;;  %vm258_vm0 = vcmask 130048   ;;  %v204_v0 = vld [vmem:[#allocation2 + $0x8] sm:$0xff]  ;;  %v203_v1 = vld [vmem:[#allocation2] sm:$0xff] }
  0x25   : > { %p181_p8 = scmp.lt.s32.totalorder %s1580_s5, 31  ;;  %1815 = vmatprep.subr.mxu0 %v204_v0  ;;  %v208_v6 = vld [vmem:[#allocation2 + $0x28] sm:$0xff]  ;;  %v207_v19 = vld [vmem:[#allocation2 + $0x20] sm:$0xff]  ;;  %v206_v20 = vld [vmem:[#allocation2 + $0x18] sm:$0xff]  ;;  %vm456_vm1 = vcmask 261120   ;;  %s177_s27 = sand.u32 1, %s2251_s13  }
  0x26   : > { %1816 = vmatpush3.msra.mxu0 %v204_v0  ;;  %1843 = vmatprep.subr.mxu1 %v208_v6  ;;  %v205_v21 = vld [vmem:[#allocation2 + $0x10] sm:$0xff]  ;;  %v224_v22 = vld [vmem:[#allocation2 + $0xa8] sm:$0xff]  ;;  %v223_v23 = vld [vmem:[#allocation2 + $0xa0] sm:$0xff]  ;;  %s1579_s30 = sshll.u32 %s177_s27, 7  ;;  %s2264_s11 = smov [#allocation5]  }
  0x27   : > { %s2842_s5 = smov (!%p181_p8, %s1580_s5), 31  ;;  %1817 = vmatprep.subr.mxu0 %v203_v1  ;;  %1844 = vmatpush3.msra.mxu1 %v208_v6  ;;  %v222_v24 = vld [vmem:[#allocation2 + $0x98] sm:$0xff]  ;;  %v221_v25 = vld [vmem:[#allocation2 + $0x90] sm:$0xff]  ;;  %v220_v26 = vld [vmem:[#allocation2 + $0x88] sm:$0xff]  ;;  %s2731_s4 = scalar_lea.vmem [#allocation5], %s1579_s30 }
  0x28   : > { %s1581_s6 = sshll.u32 %s2842_s5, 3  ;;  %1818 = vmatpush3.msra.mxu0 %v203_v1  ;;  %1845 = vmatprep.subr.mxu1 %v207_v19  ;;  %v219_v27 = vld [vmem:[#allocation2 + $0x80] sm:$0xff]  ;;  %v218_v28 = vld [vmem:[#allocation2 + $0x78] sm:$0xff]  ;;  %v217_v29 = vld [vmem:[#allocation2 + $0x70] sm:$0xff]  ;;  %s1672_s5 = sshll.u32 %s2308_s16, 11 }
  0x29   : > { %s2357_s9 = scalar_lea.vmem %s2829_s0, %s1581_s6  ;;  %1846 = vmatpush3.msra.mxu1 %v207_v19  ;;  %1875 = vmatprep.subr.mxu0 %v224_v22  ;;  %v216_v30 = vld [vmem:[#allocation2 + $0x68] sm:$0xff]  ;;  %v215_v31 = vld [vmem:[#allocation2 + $0x60] sm:$0xff]  ;;  %v214_v32 = vld [vmem:[#allocation2 + $0x58] sm:$0xff]  ;;  %s1499_s6 = sshll.u32 %s2731_s4, 4  ;;  %s2782_s6 = int_to_ptr.vmem [resolvable:$true] %s1499_s6 }
  0x2a   : > { %v187_v2 = vld [vmem:[%s2357_s9] sm:$0xff]  ;;  %v188_v3 = vld [vmem:[%s2357_s9 + $0x8] sm:$0xff]  ;;  %v189_v4 = vld [vmem:[%s2357_s9 + $0x10] sm:$0xff]  ;;  %1847 = vmatprep.subr.mxu1 %v206_v20  ;;  %s2789_s16 = scalar_lea.sflag [#allocation4], %s177_s27  ;;  %s2195_s10 = scalar_lea.vmem %s2782_s6, 2048 }
  0x2b   : > { %1819 = vmatprep.mubr.msk.f32.mxu0 %vm258_vm0, %v187_v2  ;;  %v190_v5 = vld [vmem:[%s2357_s9 + $0x18] sm:$0xff]  ;;  %v191_v7 = vld [vmem:[%s2357_s9 + $0x20] sm:$0xff]  ;;  %v192_v8 = vld [vmem:[%s2357_s9 + $0x28] sm:$0xff]  ;;  %1848 = vmatpush3.msra.mxu1 %v206_v20  ;;  %p2196_p6 = scmp.ne.s32.totalorder %s2782_s6, %s2195_s10  ;;  %s2199_s17 = sshll.u32 %s2264_s11, 4  ;;  %s2200_s17 = int_to_ptr.vmem [resolvable:$false] %s2199_s17 }
  0x2c   : > { %1820 = vmatmul.mubr.msk.f32.vlgmr.msra.gmra.mxu0 %vm258_vm0, %v188_v3  ;;  %v193_v9 = vld [vmem:[%s2357_s9 + $0x30] sm:$0xff]  ;;  %v194_v10 = vld [vmem:[%s2357_s9 + $0x38] sm:$0xff]  ;;  %v195_v11 = vld [vmem:[%s2357_s9 + $0x40] sm:$0xff]  ;;  %1849 = vmatprep.subr.mxu1 %v205_v21  ;;  %s2201_s19 = scalar_lea.vmem %s2200_s17, 4096  ;;  %p2202_p11 = scmp.lt.s32.totalorder %s2782_s6, %s2200_s17 }
  0x2d   : > { %1822 = vmatprep.mubr.msk.f32.mxu0 %vm258_vm0, %v189_v4  ;;  %v196_v12 = vld [vmem:[%s2357_s9 + $0x48] sm:$0xff]  ;;  %v197_v13 = vld [vmem:[%s2357_s9 + $0x50] sm:$0xff]  ;;  %v198_v14 = vld [vmem:[%s2357_s9 + $0x58] sm:$0xff]  ;;  %1850 = vmatpush3.msra.mxu1 %v205_v21  ;;  %p2197_p9 = pnand %p2196_p6, %p2325_p5  ;;  %p2203_p12 = scmp.lt.s32.totalorder %s2201_s19, %s2195_s10 }
  0x2e   : > { %v199_v15 = vld [vmem:[%s2357_s9 + $0x60] sm:$0xff]  ;;  %v200_v16 = vld [vmem:[%s2357_s9 + $0x68] sm:$0xff]  ;;  %v201_v17 = vld [vmem:[%s2357_s9 + $0x70] sm:$0xff]  ;;  %1876 = vmatpush3.msra.mxu0 %v224_v22 }
  0x2f   : > { %v202_v18 = vld [vmem:[%s2357_s9 + $0x78] sm:$0xff]  ;;  %1877 = vmatprep.subr.mxu0 %v223_v23  ;;  %v213_v33 = vld [vmem:[#allocation2 + $0x50] sm:$0xff]  ;;  %v212_v34 = vld [vmem:[#allocation2 + $0x48] sm:$0xff]  ;;  %s2780_s9 = scalar_lea.hbm %s2832_s3, %s1672_s5  ;;  %p2198_p10 = pneg %p2197_p9 }
  0x30   : > { %1823 = vmatmul.mubr.msk.f32.gmra.mxu0 %vm258_vm0, %v190_v5  ;;  %v1582_v36 = vld [vmem:[%s2831_s2] ss:$0 sm:$0xff]  ;;  %v210_v5 = vld [vmem:[#allocation2 + $0x38] sm:$0xff]  ;;  %v209_v6 = vld [vmem:[#allocation2 + $0x30] sm:$0xff]  ;;  %p2204_p13 = por %p2203_p12, %p2202_p11 }
  0x31   : > { %1825 = vmatprep.mubr.msk.f32.mxu0 %vm258_vm0, %v191_v7  ;;  %1878 = vmatpush3.msra.mxu0 %v223_v23  ;;  %v211_v4 = vld [vmem:[#allocation2 + $0x40] sm:$0xff]  ;;  %v228_v7 = vld [vmem:[#allocation2 + $0xc8] sm:$0xff]  ;;  %v226_v22 = vld [vmem:[#allocation2 + $0xb8] sm:$0xff] }
  0x32   : > { %1879 = vmatprep.subr.mxu0 %v222_v24  ;;  %v227_v19 = vld [vmem:[#allocation2 + $0xc0] sm:$0xff]  ;;  %p2205_p0 = pnand %p2204_p13, %p2198_p10 }
  0x33   : > { %1880 = vmatpush3.msra.mxu0 %v222_v24 }
  0x34   : > { %1826 = vmatmul.mubr.msk.f32.gmra.mxu0 %vm258_vm0, %v192_v8  ;;  %1881 = vmatprep.subr.mxu0 %v221_v25  ;;  %v2461_v8 = vld [vmem:[%s2831_s2 + $0x1] ss:$0 sm:$0xff] }
  0x35   : > { %1828 = vmatprep.mubr.msk.f32.mxu0 %vm258_vm0, %v193_v9  ;;  %1882 = vmatpush3.msra.mxu0 %v221_v25 }
  0x36   : > { %1883 = vmatprep.subr.mxu0 %v220_v26 }
  0x37   : > { %1884 = vmatpush3.msra.mxu0 %v220_v26 }
  0x38   : > { %1829 = vmatmul.mubr.msk.f32.gmra.mxu0 %vm258_vm0, %v194_v10  ;;  %1885 = vmatprep.subr.mxu0 %v219_v27 }
  0x39   : > { %1831 = vmatprep.mubr.msk.f32.mxu0 %vm258_vm0, %v195_v11  ;;  %1886 = vmatpush3.msra.mxu0 %v219_v27  ;;  %v225_v27 = vld [vmem:[#allocation2 + $0xb0] sm:$0xff] }
  0x3a   : > { %1887 = vmatprep.subr.mxu0 %v218_v28 }
  0x3b   : > { %1888 = vmatpush3.msra.mxu0 %v218_v28 }
  0x3c   : > { %1832 = vmatmul.mubr.msk.f32.gmra.mxu0 %vm258_vm0, %v196_v12  ;;  %1889 = vmatprep.subr.mxu0 %v217_v29 }
  0x3d   : > { %1834 = vmatprep.mubr.msk.f32.mxu0 %vm258_vm0, %v197_v13  ;;  %1890 = vmatpush3.msra.mxu0 %v217_v29 }
  0x3e   : > { %1891 = vmatprep.subr.mxu0 %v216_v30 }
  0x3f   : > { %1892 = vmatpush3.msra.mxu0 %v216_v30 }
  0x40   : > { %1835 = vmatmul.mubr.msk.f32.gmra.mxu0 %vm258_vm0, %v198_v14  ;;  %1893 = vmatprep.subr.mxu0 %v215_v31 }
  0x41   : > { %1837 = vmatprep.mubr.msk.f32.mxu0 %vm258_vm0, %v199_v15  ;;  %1894 = vmatpush3.msra.mxu0 %v215_v31 }
  0x42   : > { %1895 = vmatprep.subr.mxu0 %v214_v32 }
  0x43   : > { %1896 = vmatpush3.msra.mxu0 %v214_v32 }
  0x44   : > { %1838 = vmatmul.mubr.msk.f32.gmra.mxu0 %vm258_vm0, %v200_v16  ;;  %1897 = vmatprep.subr.mxu0 %v213_v33 }
  0x45   : > { %1840 = vmatprep.mubr.msk.f32.mxu0 %vm258_vm0, %v201_v17  ;;  %1898 = vmatpush3.msra.mxu0 %v213_v33 }
  0x46   : > { %1899 = vmatprep.subr.mxu0 %v212_v34 }
  0x47   : > { %1900 = vmatpush3.msra.mxu0 %v212_v34 }
  0x48   : > { %1841 = vmatmul.mubr.msk.f32.gmra.mxu0 %vm258_vm0, %v202_v18  ;;  %1901 = vmatprep.subr.mxu0 %v211_v4 }
  0x49   : > { %1902 = vmatpush3.msra.mxu0 %v211_v4 }
  0x4a   : > { %1903 = vmatprep.subr.mxu0 %v210_v5 }
  0x4b   : > { %1904 = vmatpush3.msra.mxu0 %v210_v5 }
  0x4c   : > { %1905 = vmatprep.subr.mxu0 %v209_v6 }
  0x4d   : > { %1906 = vmatpush3.msra.mxu0 %v209_v6 }
  0x4e   : > { %1987 = vmatprep.subr.mxu0 %v228_v7 }
  0xec   : > { %v1821_v35 = vpop.f32.mrf.mxu0 }
  0xed   : > { %v2396_v39 = vadd.f32 %v1821_v35, %v1582_v36 }
  0xee   : > { %v373_v37 = vpop.f32.mrf.mxu0 }
  0xef   : > { %v2394_v38 = vadd.f32 %v1582_v36, %v373_v37 }
  0xf0   : > { %v1824_v40 = vpop.f32.mrf.mxu0 }
  0xf1   : > { %1851 = vmatprep.mubr.msk.f32.mxu1 %vm456_vm1, %v2394_v38  ;;  %v2404_v43 = vadd.f32 %v1824_v40, %v1582_v36 }
  0xf2   : > { %v383_v41 = vpop.f32.mrf.mxu0  ;;  %1852 = vmatmul.mubr.msk.f32.vlgmr.msra.gmra.mxu1 %vm456_vm1, %v2396_v39 }
  0xf3   : > { %v2402_v42 = vadd.f32 %v1582_v36, %v383_v41 }
  0xf4   : > { %v1827_v44 = vpop.f32.mrf.mxu0 }
  0xf5   : > { %1854 = vmatprep.mubr.msk.f32.mxu1 %vm456_vm1, %v2402_v42  ;;  %v2412_v47 = vadd.f32 %v1827_v44, %v1582_v36 }
  0xf6   : > { %v393_v45 = vpop.f32.mrf.mxu0  ;;  %1855 = vmatmul.mubr.msk.f32.gmra.mxu1 %vm456_vm1, %v2404_v43 }
  0xf7   : > { %v2410_v46 = vadd.f32 %v1582_v36, %v393_v45 }
  0xf8   : > { %v1830_v48 = vpop.f32.mrf.mxu0 }
  0xf9   : > { %1857 = vmatprep.mubr.msk.f32.mxu1 %vm456_vm1, %v2410_v46  ;;  %v2420_v51 = vadd.f32 %v1830_v48, %v1582_v36 }
  0xfa   : > { %v403_v49 = vpop.f32.mrf.mxu0  ;;  %1858 = vmatmul.mubr.msk.f32.gmra.mxu1 %vm456_vm1, %v2412_v47 }
  0xfb   : > { %v2418_v50 = vadd.f32 %v1582_v36, %v403_v49 }
  0xfc   : > { %v1833_v52 = vpop.f32.mrf.mxu0 }
  0xfd   : > { %1860 = vmatprep.mubr.msk.f32.mxu1 %vm456_vm1, %v2418_v50  ;;  %v2428_v55 = vadd.f32 %v1833_v52, %v1582_v36 }
  0xfe   : > { %v413_v53 = vpop.f32.mrf.mxu0  ;;  %1861 = vmatmul.mubr.msk.f32.gmra.mxu1 %vm456_vm1, %v2420_v51 }
  0xff   : > { %v2426_v54 = vadd.f32 %v1582_v36, %v413_v53 }
 0x100   : > { %v1836_v56 = vpop.f32.mrf.mxu0 }
 0x101   : > { %1863 = vmatprep.mubr.msk.f32.mxu1 %vm456_vm1, %v2426_v54  ;;  %v2436_v59 = vadd.f32 %v1836_v56, %v1582_v36 }
 0x102   : > { %v423_v57 = vpop.f32.mrf.mxu0  ;;  %1864 = vmatmul.mubr.msk.f32.gmra.mxu1 %vm456_vm1, %v2428_v55 }
 0x103   : > { %v2434_v58 = vadd.f32 %v1582_v36, %v423_v57 }
 0x104   : > { %v1839_v60 = vpop.f32.mrf.mxu0 }
 0x105   : > { %1866 = vmatprep.mubr.msk.f32.mxu1 %vm456_vm1, %v2434_v58  ;;  %v2444_v63 = vadd.f32 %v1839_v60, %v1582_v36 }
 0x106   : > { %v433_v61 = vpop.f32.mrf.mxu0  ;;  %1867 = vmatmul.mubr.msk.f32.gmra.mxu1 %vm456_vm1, %v2436_v59 }
 0x107   : > { %v2442_v62 = vadd.f32 %v1582_v36, %v433_v61 }
 0x108   : > { %v1842_v0 = vpop.f32.mrf.mxu0 }
 0x109   : > { %1869 = vmatprep.mubr.msk.f32.mxu1 %vm456_vm1, %v2442_v62  ;;  %v2452_v3 = vadd.f32 %v1842_v0, %v1582_v36 }
 0x10a   : > { %v443_v1 = vpop.f32.mrf.mxu0  ;;  %1870 = vmatmul.mubr.msk.f32.gmra.mxu1 %vm456_vm1, %v2444_v63 }
 0x10b   : > { %v2450_v2 = vadd.f32 %v1582_v36, %v443_v1 }
 0x10d   : > { %1872 = vmatprep.mubr.msk.f32.mxu1 %vm456_vm1, %v2450_v2 }
 0x10e   : > { %1873 = vmatmul.mubr.msk.f32.gmra.mxu1 %vm456_vm1, %v2452_v3 }
 0x1b2   : > { %v1853_v9 = vpop.f32.mrf.mxu1 }
 0x1b3   : > { %v577_v10 = vadd.f32 %v1853_v9, %v2461_v8 }
 0x1b4   : > { %v571_v11 = vpop.f32.mrf.mxu1 }
 0x1b5   : > { %v572_v12 = vadd.f32 %v2461_v8, %v571_v11  ;;  %v651_v15 = vmax.f32 %v577_v10, 0.0 }
 0x1b6   : > { %v1856_v13 = vpop.f32.mrf.mxu1 }
 0x1b7   : > { %v650_v14 = vmax.f32 %v572_v12, 0.0  ;;  %v587_v16 = vadd.f32 %v1856_v13, %v2461_v8  ;;  %v2517_v13 = vld [vmem:[%s2831_s2 + $0x2] ss:$0 sm:$0xff] }
 0x1b8   : > { %v581_v17 = vpop.f32.mrf.mxu1 }
 0x1b9   : > { %v582_v18 = vadd.f32 %v2461_v8, %v581_v17  ;;  %1907 = vmatprep.mubr.f32.mxu0 %v650_v14  ;;  %v653_v23 = vmax.f32 %v587_v16, 0.0 }
 0x1ba   : > { %v1859_v20 = vpop.f32.mrf.mxu1  ;;  %1908 = vmatmul.mubr.f32.vlgmr.msra.gmra.mxu0 %v651_v15 }
 0x1bb   : > { %v652_v21 = vmax.f32 %v582_v18, 0.0  ;;  %1988 = vmatpush3.msra.mxu0 %v228_v7  ;;  %v597_v24 = vadd.f32 %v1859_v20, %v2461_v8 }
 0x1bc   : > { %v591_v25 = vpop.f32.mrf.mxu1  ;;  %1989 = vmatprep.subr.mxu0 %v227_v19 }
 0x1bd   : > { %v592_v26 = vadd.f32 %v2461_v8, %v591_v25  ;;  %1910 = vmatprep.mubr.f32.mxu0 %v652_v21  ;;  %1990 = vmatpush3.msra.mxu0 %v227_v19  ;;  %v655_v30 = vmax.f32 %v597_v24, 0.0 }
 0x1be   : > { %v1862_v28 = vpop.f32.mrf.mxu1  ;;  %1911 = vmatmul.mubr.f32.gmra.mxu0 %v653_v23  ;;  %1991 = vmatprep.subr.mxu0 %v226_v22 }
 0x1bf   : > { %v654_v29 = vmax.f32 %v592_v26, 0.0  ;;  %1992 = vmatpush3.msra.mxu0 %v226_v22  ;;  %v607_v31 = vadd.f32 %v1862_v28, %v2461_v8 }
 0x1c0   : > { %v601_v32 = vpop.f32.mrf.mxu1  ;;  %1993 = vmatprep.subr.mxu0 %v225_v27 }
 0x1c1   : > { %v602_v33 = vadd.f32 %v2461_v8, %v601_v32  ;;  %1913 = vmatprep.mubr.f32.mxu0 %v654_v29  ;;  %1994 = vmatpush3.msra.mxu0 %v225_v27  ;;  %v657_v36 = vmax.f32 %v607_v31, 0.0 }
 0x1c2   : > { %v1865_v34 = vpop.f32.mrf.mxu1  ;;  %1914 = vmatmul.mubr.f32.gmra.mxu0 %v655_v30 }
 0x1c3   : > { %v656_v35 = vmax.f32 %v602_v33, 0.0  ;;  %v617_v37 = vadd.f32 %v1865_v34, %v2461_v8 }
 0x1c4   : > { %v611_v40 = vpop.f32.mrf.mxu1 }
 0x1c5   : > { %v612_v41 = vadd.f32 %v2461_v8, %v611_v40  ;;  %1916 = vmatprep.mubr.f32.mxu0 %v656_v35  ;;  %v659_v48 = vmax.f32 %v617_v37, 0.0 }
 0x1c6   : > { %v1868_v44 = vpop.f32.mrf.mxu1  ;;  %1917 = vmatmul.mubr.f32.gmra.mxu0 %v657_v36 }
 0x1c7   : > { %v658_v45 = vmax.f32 %v612_v41, 0.0  ;;  %v627_v49 = vadd.f32 %v1868_v44, %v2461_v8 }
 0x1c8   : > { %v621_v52 = vpop.f32.mrf.mxu1 }
 0x1c9   : > { %v622_v53 = vadd.f32 %v2461_v8, %v621_v52  ;;  %1919 = vmatprep.mubr.f32.mxu0 %v658_v45  ;;  %v661_v60 = vmax.f32 %v627_v49, 0.0 }
 0x1ca   : > { %v1871_v56 = vpop.f32.mrf.mxu1  ;;  %1920 = vmatmul.mubr.f32.gmra.mxu0 %v659_v48 }
 0x1cb   : > { %v660_v57 = vmax.f32 %v622_v53, 0.0  ;;  %v637_v61 = vadd.f32 %v1871_v56, %v2461_v8 }
 0x1cc   : > { %v631_v0 = vpop.f32.mrf.mxu1 }
 0x1cd   : > { %v632_v1 = vadd.f32 %v2461_v8, %v631_v0  ;;  %1922 = vmatprep.mubr.f32.mxu0 %v660_v57  ;;  %v663_v6 = vmax.f32 %v637_v61, 0.0 }
 0x1ce   : > { %v1874_v4 = vpop.f32.mrf.mxu1  ;;  %1923 = vmatmul.mubr.f32.gmra.mxu0 %v661_v60 }
 0x1cf   : > { %v662_v5 = vmax.f32 %v632_v1, 0.0  ;;  %v647_v7 = vadd.f32 %v1874_v4, %v2461_v8 }
 0x1d0   : > { %v641_v9 = vpop.f32.mrf.mxu1 }
 0x1d1   : > { %v642_v10 = vadd.f32 %v2461_v8, %v641_v9  ;;  %1925 = vmatprep.mubr.f32.mxu0 %v662_v5  ;;  %v665_v12 = vmax.f32 %v647_v7, 0.0  ;;  %v2511_v8 = vld [vmem:[#allocation2 + $0x168] sm:$0xff] }
 0x1d2   : > { %1926 = vmatmul.mubr.f32.gmra.mxu0 %v663_v6 }
 0x1d3   : > { %v664_v11 = vmax.f32 %v642_v10, 0.0 }
 0x1d5   : > { %1928 = vmatprep.mubr.f32.mxu0 %v664_v11 }
 0x1d6   : > { %1929 = vmatmul.mubr.f32.gmra.mxu0 %v665_v12 }
 0x1d7   : > { %1995 = vmatprep.mubr.msk.f32.mxu0 %vm456_vm1, %v2394_v38  ;;  %v244_v38 = vld [vmem:[#allocation2 + $0x148] sm:$0xff] }
 0x1d8   : > { %1931 = vmatprep.subr.mxu1 %v244_v38 }
 0x1d9   : > { %1932 = vmatpush3.msra.mxu1 %v244_v38 }
 0x1da   : > { %1996 = vmatmul.mubr.msk.f32.vlgmr.msra.gmra.mxu0 %vm456_vm1, %v2396_v39  ;;  %v243_v39 = vld [vmem:[#allocation2 + $0x140] sm:$0xff] }
 0x1db   : > { %1998 = vmatprep.mubr.msk.f32.mxu0 %vm456_vm1, %v2402_v42  ;;  %1933 = vmatprep.subr.mxu1 %v243_v39  ;;  %v242_v42 = vld [vmem:[#allocation2 + $0x138] sm:$0xff] }
 0x1dc   : > { %1934 = vmatpush3.msra.mxu1 %v243_v39  ;;  %v815_v39 = vlaneseq }
 0x1dd   : > { %1935 = vmatprep.subr.mxu1 %v242_v42 }
 0x1de   : > { %1999 = vmatmul.mubr.msk.f32.gmra.mxu0 %vm456_vm1, %v2404_v43  ;;  %1936 = vmatpush3.msra.mxu1 %v242_v42  ;;  %v241_v43 = vld [vmem:[#allocation2 + $0x130] sm:$0xff] }
 0x1df   : > { %2001 = vmatprep.mubr.msk.f32.mxu0 %vm456_vm1, %v2410_v46  ;;  %1937 = vmatprep.subr.mxu1 %v241_v43  ;;  %v240_v46 = vld [vmem:[#allocation2 + $0x128] sm:$0xff] }
 0x1e0   : > { %1938 = vmatpush3.msra.mxu1 %v241_v43 }
 0x1e1   : > { %1939 = vmatprep.subr.mxu1 %v240_v46 }
 0x1e2   : > { %2002 = vmatmul.mubr.msk.f32.gmra.mxu0 %vm456_vm1, %v2412_v47  ;;  %1940 = vmatpush3.msra.mxu1 %v240_v46  ;;  %v239_v47 = vld [vmem:[#allocation2 + $0x120] sm:$0xff] }
 0x1e3   : > { %2004 = vmatprep.mubr.msk.f32.mxu0 %vm456_vm1, %v2418_v50  ;;  %1941 = vmatprep.subr.mxu1 %v239_v47  ;;  %v238_v50 = vld [vmem:[#allocation2 + $0x118] sm:$0xff] }
 0x1e4   : > { %1942 = vmatpush3.msra.mxu1 %v239_v47 }
 0x1e5   : > { %1943 = vmatprep.subr.mxu1 %v238_v50 }
 0x1e6   : > { %2005 = vmatmul.mubr.msk.f32.gmra.mxu0 %vm456_vm1, %v2420_v51  ;;  %1944 = vmatpush3.msra.mxu1 %v238_v50  ;;  %v237_v51 = vld [vmem:[#allocation2 + $0x110] sm:$0xff] }
 0x1e7   : > { %2007 = vmatprep.mubr.msk.f32.mxu0 %vm456_vm1, %v2426_v54  ;;  %1945 = vmatprep.subr.mxu1 %v237_v51  ;;  %v236_v54 = vld [vmem:[#allocation2 + $0x108] sm:$0xff] }
 0x1e8   : > { %1946 = vmatpush3.msra.mxu1 %v237_v51 }
 0x1e9   : > { %1947 = vmatprep.subr.mxu1 %v236_v54 }
 0x1ea   : > { %2008 = vmatmul.mubr.msk.f32.gmra.mxu0 %vm456_vm1, %v2428_v55  ;;  %1948 = vmatpush3.msra.mxu1 %v236_v54  ;;  %v235_v55 = vld [vmem:[#allocation2 + $0x100] sm:$0xff] }
 0x1eb   : > { %2010 = vmatprep.mubr.msk.f32.mxu0 %vm456_vm1, %v2434_v58  ;;  %1949 = vmatprep.subr.mxu1 %v235_v55  ;;  %v234_v58 = vld [vmem:[#allocation2 + $0xf8] sm:$0xff] }
 0x1ec   : > { %1950 = vmatpush3.msra.mxu1 %v235_v55 }
 0x1ed   : > { %1951 = vmatprep.subr.mxu1 %v234_v58 }
 0x1ee   : > { %2011 = vmatmul.mubr.msk.f32.gmra.mxu0 %vm456_vm1, %v2436_v59  ;;  %1952 = vmatpush3.msra.mxu1 %v234_v58  ;;  %v233_v59 = vld [vmem:[#allocation2 + $0xf0] sm:$0xff] }
 0x1ef   : > { %2013 = vmatprep.mubr.msk.f32.mxu0 %vm456_vm1, %v2442_v62  ;;  %1953 = vmatprep.subr.mxu1 %v233_v59  ;;  %v232_v62 = vld [vmem:[#allocation2 + $0xe8] sm:$0xff] }
 0x1f0   : > { %1954 = vmatpush3.msra.mxu1 %v233_v59 }
 0x1f1   : > { %1955 = vmatprep.subr.mxu1 %v232_v62 }
 0x1f2   : > { %2014 = vmatmul.mubr.msk.f32.gmra.mxu0 %vm456_vm1, %v2444_v63  ;;  %1956 = vmatpush3.msra.mxu1 %v232_v62  ;;  %v231_v63 = vld [vmem:[#allocation2 + $0xe0] sm:$0xff]  ;;  %v2578_v62 = vand.u32 127, %v815_v39 }
 0x1f3   : > { %2016 = vmatprep.mubr.msk.f32.mxu0 %vm456_vm1, %v2450_v2  ;;  %1957 = vmatprep.subr.mxu1 %v231_v63  ;;  %v230_v2 = vld [vmem:[#allocation2 + $0xd8] sm:$0xff] }
 0x1f4   : > { %1958 = vmatpush3.msra.mxu1 %v231_v63  ;;  %vm817_vm2 = vcmp.eq.s32.totalorder %v2578_v62, 6  ;;  %v2686_v62 = vld [vmem:[%s2831_s2 + $0x3] ss:$0 sm:$0xff] }
 0x1f5   : > { %1959 = vmatprep.subr.mxu1 %v230_v2 }
 0x1f6   : > { %2017 = vmatmul.mubr.msk.f32.gmra.mxu0 %vm456_vm1, %v2452_v3  ;;  %1960 = vmatpush3.msra.mxu1 %v230_v2  ;;  %v229_v3 = vld [vmem:[#allocation2 + $0xd0] sm:$0xff] }
 0x1f7   : > { %1961 = vmatprep.subr.mxu1 %v229_v3 }
 0x1f8   : > { %1962 = vmatpush3.msra.mxu1 %v229_v3 }
 0x1f9   : > { %2019 = vmatprep.subr.mxu1 %v2511_v8 }
 0x27a   : > { %v1909_v14 = vpop.f32.mrf.mxu0 }
 0x27b   : > { %v2520_v15 = vadd.f32 %v1909_v14, %v2517_v13 }
 0x27c   : > { %v736_v16 = vpop.f32.mrf.mxu0 }
 0x27d   : > { %v1618_v17 = vmul.f32 -1.442695, %v2520_v15  ;;  %v2524_v18 = vadd.f32 %v2517_v13, %v736_v16 }
 0x27e   : > { %v1912_v19 = vpop.f32.mrf.mxu0 }
 0x27f   : > { %2105 = vpow2.f32 %v1618_v17  ;;  %v1617_v20 = vmul.f32 -1.442695, %v2524_v18  ;;  %v2528_v21 = vadd.f32 %v1912_v19, %v2517_v13 }
 0x280   : > { %v746_v22 = vpop.f32.mrf.mxu0 }
 0x281   : > { %2107 = vpow2.f32 %v1617_v20  ;;  %v1620_v23 = vmul.f32 -1.442695, %v2528_v21  ;;  %v2532_v24 = vadd.f32 %v2517_v13, %v746_v22 }
 0x282   : > { %v1915_v25 = vpop.f32.mrf.mxu0 }
 0x283   : > { %2109 = vpow2.f32 %v1620_v23  ;;  %v1619_v26 = vmul.f32 -1.442695, %v2532_v24  ;;  %v2536_v27 = vadd.f32 %v1915_v25, %v2517_v13 }
 0x284   : > { %v756_v28 = vpop.f32.mrf.mxu0 }
 0x285   : > { %2111 = vpow2.f32 %v1619_v26  ;;  %v1622_v29 = vmul.f32 -1.442695, %v2536_v27  ;;  %v2540_v30 = vadd.f32 %v2517_v13, %v756_v28 }
 0x286   : > { %v1918_v31 = vpop.f32.mrf.mxu0 }
 0x287   : > { %2113 = vpow2.f32 %v1622_v29  ;;  %v1621_v32 = vmul.f32 -1.442695, %v2540_v30  ;;  %v2544_v33 = vadd.f32 %v1918_v31, %v2517_v13 }
 0x288   : > { %v766_v34 = vpop.f32.mrf.mxu0 }
 0x289   : > { %2115 = vpow2.f32 %v1621_v32  ;;  %v1624_v35 = vmul.f32 -1.442695, %v2544_v33  ;;  %v2548_v36 = vadd.f32 %v2517_v13, %v766_v34  ;;  %v247_v32 = vld [vmem:[#allocation2 + $0x160] sm:$0xff] }
 0x28a   : > { %v1921_v37 = vpop.f32.mrf.mxu0 }
 0x28b   : > { %2117 = vpow2.f32 %v1624_v35  ;;  %v1623_v40 = vmul.f32 -1.442695, %v2548_v36  ;;  %v2552_v41 = vadd.f32 %v1921_v37, %v2517_v13 }
 0x28c   : > { %v2106_v44 = vpop.eup %2105  ;;  %v776_v45 = vpop.f32.mrf.mxu0 }
 0x28d   : > { %v867_v48 = vadd.f32 1.0, %v2106_v44  ;;  %2119 = vpow2.f32 %v1623_v40  ;;  %v1626_v49 = vmul.f32 -1.442695, %v2552_v41  ;;  %v2556_v52 = vadd.f32 %v2517_v13, %v776_v45 }
 0x28e   : > { %v2108_v53 = vpop.eup %2107  ;;  %v1924_v56 = vpop.f32.mrf.mxu0 }
 0x28f   : > { %2121 = vrcp.f32 %v867_v48  ;;  %v866_v57 = vadd.f32 1.0, %v2108_v53  ;;  %v1625_v60 = vmul.f32 -1.442695, %v2556_v52  ;;  %v2560_v61 = vadd.f32 %v1924_v56, %v2517_v13 }
 0x290   : > { %v2110_v0 = vpop.eup %2109  ;;  %2123 = vpow2.f32 %v1626_v49  ;;  %v786_v1 = vpop.f32.mrf.mxu0 }
 0x291   : > { %2125 = vrcp.f32 %v866_v57  ;;  %v869_v4 = vadd.f32 1.0, %v2110_v0  ;;  %v1628_v5 = vmul.f32 -1.442695, %v2560_v61  ;;  %v2564_v6 = vadd.f32 %v2517_v13, %v786_v1 }
 0x292   : > { %v2112_v7 = vpop.eup %2111  ;;  %2127 = vpow2.f32 %v1625_v60  ;;  %v1927_v9 = vpop.f32.mrf.mxu0 }
 0x293   : > { %2129 = vrcp.f32 %v869_v4  ;;  %v868_v10 = vadd.f32 1.0, %v2112_v7  ;;  %v1627_v11 = vmul.f32 -1.442695, %v2564_v6  ;;  %v2568_v12 = vadd.f32 %v1927_v9, %v2517_v13 }
 0x294   : > { %v2114_v38 = vpop.eup %2113  ;;  %2131 = vpow2.f32 %v1628_v5  ;;  %v796_v42 = vpop.f32.mrf.mxu0 }
 0x295   : > { %2133 = vrcp.f32 %v868_v10  ;;  %v871_v43 = vadd.f32 1.0, %v2114_v38  ;;  %v1630_v46 = vmul.f32 -1.442695, %v2568_v12  ;;  %v2572_v47 = vadd.f32 %v2517_v13, %v796_v42 }
 0x296   : > { %v2116_v50 = vpop.eup %2115  ;;  %2135 = vpow2.f32 %v1627_v11  ;;  %v1930_v51 = vpop.f32.mrf.mxu0 }
 0x297   : > { %2137 = vrcp.f32 %v871_v43  ;;  %v870_v54 = vadd.f32 1.0, %v2116_v50  ;;  %v1629_v55 = vmul.f32 -1.442695, %v2572_v47  ;;  %v2576_v58 = vadd.f32 %v1930_v51, %v2517_v13 }
 0x298   : > { %v2118_v59 = vpop.eup %2117  ;;  %2139 = vpow2.f32 %v1630_v46  ;;  %v806_v63 = vpop.f32.mrf.mxu0 }
 0x299   : > { %2141 = vrcp.f32 %v870_v54  ;;  %v873_v2 = vadd.f32 1.0, %v2118_v59  ;;  %v1632_v3 = vmul.f32 -1.442695, %v2576_v58  ;;  %v2582_v14 = vadd.f32 %v2517_v13, %v806_v63 }
 0x29a   : > { %v2120_v16 = vpop.eup %2119  ;;  %2143 = vpow2.f32 %v1629_v55  ;;  %v1997_v51 = vpop.f32.mrf.mxu0 }
 0x29b   : > { %2145 = vrcp.f32 %v873_v2  ;;  %v872_v17 = vadd.f32 1.0, %v2120_v16  ;;  %v1631_v19 = vmul.f32 -1.442695, %v2582_v14 }
 0x29c   : > { %v2122_v20 = vpop.eup %2121  ;;  %2147 = vpow2.f32 %v1632_v3  ;;  %v1141_v54 = vpop.f32.mrf.mxu0 }
 0x29d   : > { %v2124_v22 = vpop.eup %2123  ;;  %2149 = vrcp.f32 %v872_v17  ;;  %v2594_v29 = vsel %vm817_vm2, %v2122_v20, %v2520_v15 }
 0x29e   : > { %v2126_v23 = vpop.eup %2125  ;;  %v875_v25 = vadd.f32 1.0, %v2124_v22  ;;  %2151 = vpow2.f32 %v1631_v19  ;;  %v2000_v55 = vpop.f32.mrf.mxu0 }
 0x29f   : > { %v2128_v26 = vpop.eup %2127  ;;  %v2589_v13 = vsel %vm817_vm2, %v2126_v23, %v2524_v18  ;;  %v246_v18 = vld [vmem:[#allocation2 + $0x158] sm:$0xff] }
 0x2a0   : > { %v2130_v28 = vpop.eup %2129  ;;  %v874_v31 = vadd.f32 1.0, %v2128_v26  ;;  %1963 = vmatprep.mubr.f32.mxu1 %v2589_v13  ;;  %2153 = vrcp.f32 %v875_v25  ;;  %v1151_v59 = vpop.f32.mrf.mxu0 }
 0x2a1   : > { %v2132_v34 = vpop.eup %2131  ;;  %1964 = vmatmul.mubr.f32.vlgmr.msra.gmra.mxu1 %v2594_v29  ;;  %v2608_v48 = vsel %vm817_vm2, %v2130_v28, %v2528_v21 }
 0x2a2   : > { %v2134_v35 = vpop.eup %2133  ;;  %2155 = vrcp.f32 %v874_v31  ;;  %v877_v37 = vadd.f32 1.0, %v2132_v34  ;;  %2020 = vmatpush3.msra.mxu1 %v2511_v8  ;;  %v2003_v63 = vpop.f32.mrf.mxu0 }
 0x2a3   : > { %v2136_v40 = vpop.eup %2135  ;;  %v2602_v15 = vsel %vm817_vm2, %v2134_v35, %v2532_v24  ;;  %2021 = vmatprep.subr.mxu1 %v247_v32 }
 0x2a4   : > { %v2138_v44 = vpop.eup %2137  ;;  %v876_v45 = vadd.f32 1.0, %v2136_v40  ;;  %1966 = vmatprep.mubr.f32.mxu1 %v2602_v15  ;;  %2022 = vmatpush3.msra.mxu1 %v247_v32  ;;  %2157 = vrcp.f32 %v877_v37  ;;  %v1161_v2 = vpop.f32.mrf.mxu0 }
 0x2a5   : > { %v2140_v49 = vpop.eup %2139  ;;  %1967 = vmatmul.mubr.f32.gmra.mxu1 %v2608_v48  ;;  %2023 = vmatprep.subr.mxu1 %v246_v18  ;;  %v2620_v21 = vsel %vm817_vm2, %v2138_v44, %v2536_v27 }
 0x2a6   : > { %v2142_v8 = vpop.eup %2141  ;;  %2159 = vrcp.f32 %v876_v45  ;;  %v879_v24 = vadd.f32 1.0, %v2140_v49  ;;  %2024 = vmatpush3.msra.mxu1 %v246_v18  ;;  %v2006_v3 = vpop.f32.mrf.mxu0 }
 0x2a7   : > { %v2144_v53 = vpop.eup %2143  ;;  %v2614_v56 = vsel %vm817_vm2, %v2142_v8, %v2540_v30 }
 0x2a8   : > { %v2146_v57 = vpop.eup %2145  ;;  %v878_v60 = vadd.f32 1.0, %v2144_v53  ;;  %1969 = vmatprep.mubr.f32.mxu1 %v2614_v56  ;;  %2161 = vrcp.f32 %v879_v24 }
 0x2a9   : > { %v2148_v0 = vpop.eup %2147  ;;  %1970 = vmatmul.mubr.f32.gmra.mxu1 %v2620_v21  ;;  %v2632_v27 = vsel %vm817_vm2, %v2146_v57, %v2544_v33 }
 0x2aa   : > { %v2150_v1 = vpop.eup %2149  ;;  %2163 = vrcp.f32 %v878_v60  ;;  %v881_v4 = vadd.f32 1.0, %v2148_v0 }
 0x2ab   : > { %v2152_v5 = vpop.eup %2151  ;;  %v2626_v30 = vsel %vm817_vm2, %v2150_v1, %v2548_v36 }
 0x2ac   : > { %v880_v7 = vadd.f32 1.0, %v2152_v5  ;;  %1972 = vmatprep.mubr.f32.mxu1 %v2626_v30  ;;  %2165 = vrcp.f32 %v881_v4 }
 0x2ad   : > { %1973 = vmatmul.mubr.f32.gmra.mxu1 %v2632_v27  ;;  %v2154_v9 = vpop.eup %2153 }
 0x2ae   : > { %2167 = vrcp.f32 %v880_v7  ;;  %v2644_v36 = vsel %vm817_vm2, %v2154_v9, %v2552_v41 }
 0x2af   : > { %v2156_v10 = vpop.eup %2155 }
 0x2b0   : > { %v2638_v11 = vsel %vm817_vm2, %v2156_v10, %v2556_v52 }
 0x2b1   : > { %1975 = vmatprep.mubr.f32.mxu1 %v2638_v11  ;;  %v2158_v33 = vpop.eup %2157 }
 0x2b2   : > { %1976 = vmatmul.mubr.f32.gmra.mxu1 %v2644_v36  ;;  %v2656_v52 = vsel %vm817_vm2, %v2158_v33, %v2560_v61 }
 0x2b3   : > { %v2160_v38 = vpop.eup %2159 }
 0x2b4   : > { %v2650_v39 = vsel %vm817_vm2, %v2160_v38, %v2564_v6 }
 0x2b5   : > { %1978 = vmatprep.mubr.f32.mxu1 %v2650_v39  ;;  %v2162_v42 = vpop.eup %2161 }
 0x2b6   : > { %1979 = vmatmul.mubr.f32.gmra.mxu1 %v2656_v52  ;;  %v2668_v6 = vsel %vm817_vm2, %v2162_v42, %v2568_v12  ;;  %v245_v12 = vld [vmem:[#allocation2 + $0x150] sm:$0xff] }
 0x2b7   : > { %v2164_v41 = vpop.eup %2163  ;;  %2025 = vmatprep.subr.mxu1 %v245_v12 }
 0x2b8   : > { %v2662_v43 = vsel %vm817_vm2, %v2164_v41, %v2572_v47  ;;  %2026 = vmatpush3.msra.mxu1 %v245_v12 }
 0x2b9   : > { %1981 = vmatprep.mubr.f32.mxu1 %v2662_v43  ;;  %v2166_v46 = vpop.eup %2165 }
 0x2ba   : > { %1982 = vmatmul.mubr.f32.gmra.mxu1 %v2668_v6  ;;  %v2680_v47 = vsel %vm817_vm2, %v2166_v46, %v2576_v58 }
 0x2bb   : > { %v2168_v61 = vpop.eup %2167 }
 0x2bc   : > { %v2674_v50 = vsel %vm817_vm2, %v2168_v61, %v2582_v14  ;;  %v1171_v14 = vpop.f32.mrf.mxu0 }
 0x2bd   : > { %1984 = vmatprep.mubr.f32.mxu1 %v2674_v50 }
 0x2be   : > { %1985 = vmatmul.mubr.f32.gmra.mxu1 %v2680_v47  ;;  %v2009_v19 = vpop.f32.mrf.mxu0 }
 0x2c0   : > { %v1181_v31 = vpop.f32.mrf.mxu0 }
 0x2c2   : > { %v2012_v49 = vpop.f32.mrf.mxu0 }
 0x2c4   : > { %v1191_v5 = vpop.f32.mrf.mxu0 }
 0x2c6   : > { %v2015_v46 = vpop.f32.mrf.mxu0 }
 0x361   : > { %v1965_v16 = vpop.f32.mrf.mxu1 }
 0x362   : > { %v1147_v58 = vadd.f32 %v1997_v51, %v1965_v16 }
 0x363   : > { %v996_v17 = vpop.f32.mrf.mxu1 }
 0x364   : > { %v1142_v20 = vadd.f32 %v1141_v54, %v996_v17  ;;  %v1225_v22 = vadd.f32 %v2686_v62, %v1147_v58 }
 0x365   : > { %v1968_v23 = vpop.f32.mrf.mxu1 }
 0x366   : > { %v1224_v25 = vadd.f32 %v2686_v62, %v1142_v20  ;;  %v1157_v26 = vadd.f32 %v2000_v55, %v1968_v23  ;;  %v1241_v35 = vmax.f32 %v1225_v22, 0.0 }
 0x367   : > { %v1006_v28 = vpop.f32.mrf.mxu1 }
 0x368   : > { %v1240_v32 = vmax.f32 %v1224_v25, 0.0  ;;  %v1152_v34 = vadd.f32 %v1151_v59, %v1006_v28  ;;  %v1227_v37 = vadd.f32 %v2686_v62, %v1157_v26 }
 0x369   : > { %v1971_v18 = vpop.f32.mrf.mxu1 }
 0x36a   : > { %v1226_v40 = vadd.f32 %v2686_v62, %v1152_v34  ;;  %v1167_v44 = vadd.f32 %v2003_v63, %v1971_v18  ;;  %2027 = vmatprep.mubr.msk.f32.mxu1 %vm456_vm1, %v1240_v32  ;;  %v1243_v53 = vmax.f32 %v1227_v37, 0.0 }
 0x36b   : > { %v1016_v45 = vpop.f32.mrf.mxu1  ;;  %2028 = vmatmul.mubr.msk.f32.vlgmr.msra.gmra.mxu1 %vm456_vm1, %v1241_v35 }
 0x36c   : > { %v1242_v8 = vmax.f32 %v1226_v40, 0.0  ;;  %v1162_v24 = vadd.f32 %v1161_v2, %v1016_v45  ;;  %v1229_v57 = vadd.f32 %v2686_v62, %v1167_v44 }
 0x36d   : > { %v1974_v60 = vpop.f32.mrf.mxu1 }
 0x36e   : > { %v1228_v0 = vadd.f32 %v2686_v62, %v1162_v24  ;;  %v1177_v1 = vadd.f32 %v2006_v3, %v1974_v60  ;;  %2030 = vmatprep.mubr.msk.f32.mxu1 %vm456_vm1, %v1242_v8  ;;  %v1245_v10 = vmax.f32 %v1229_v57, 0.0  ;;  %v1201_v3 = vpop.f32.mrf.mxu0 }
 0x36f   : > { %v1026_v4 = vpop.f32.mrf.mxu1  ;;  %2031 = vmatmul.mubr.msk.f32.gmra.mxu1 %vm456_vm1, %v1243_v53 }
 0x370   : > { %v1244_v7 = vmax.f32 %v1228_v0, 0.0  ;;  %v1172_v9 = vadd.f32 %v1171_v14, %v1026_v4  ;;  %v1231_v33 = vadd.f32 %v2686_v62, %v1177_v1  ;;  %v2018_v25 = vpop.f32.mrf.mxu0  ;;  %v2724_v0 = vld [vmem:[%s2831_s2 + $0x4] ss:$0 sm:$0xff] }
 0x372   : > { %v1230_v38 = vadd.f32 %v2686_v62, %v1172_v9  ;;  %v1977_v42 = vpop.f32.mrf.mxu1  ;;  %2033 = vmatprep.mubr.msk.f32.mxu1 %vm456_vm1, %v1244_v7  ;;  %v1247_v51 = vmax.f32 %v1231_v33, 0.0  ;;  %v1211_v40 = vpop.f32.mrf.mxu0 }
 0x373   : > { %v1187_v41 = vadd.f32 %v2009_v19, %v1977_v42  ;;  %2034 = vmatmul.mubr.msk.f32.gmra.mxu1 %vm456_vm1, %v1245_v10 }
 0x374   : > { %v1246_v61 = vmax.f32 %v1230_v38, 0.0  ;;  %v1036_v12 = vpop.f32.mrf.mxu1 }
 0x375   : > { %v1182_v54 = vadd.f32 %v1181_v31, %v1036_v12  ;;  %v1233_v55 = vadd.f32 %v2686_v62, %v1187_v41 }
 0x376   : > { %v1980_v59 = vpop.f32.mrf.mxu1  ;;  %2036 = vmatprep.mubr.msk.f32.mxu1 %vm456_vm1, %v1246_v61 }
 0x377   : > { %v1232_v63 = vadd.f32 %v2686_v62, %v1182_v54  ;;  %v1197_v2 = vadd.f32 %v2012_v49, %v1980_v59  ;;  %2037 = vmatmul.mubr.msk.f32.gmra.mxu1 %vm456_vm1, %v1247_v51  ;;  %v1249_v17 = vmax.f32 %v1233_v55, 0.0 }
 0x378   : > { %v1046_v14 = vpop.f32.mrf.mxu1 }
 0x379   : > { %v1248_v16 = vmax.f32 %v1232_v63, 0.0  ;;  %v1192_v58 = vadd.f32 %v1191_v5, %v1046_v14  ;;  %v1235_v19 = vadd.f32 %v2686_v62, %v1197_v2 }
 0x37a   : > { %v1983_v20 = vpop.f32.mrf.mxu1 }
 0x37b   : > { %v1234_v22 = vadd.f32 %v2686_v62, %v1192_v58  ;;  %v1207_v23 = vadd.f32 %v2015_v46, %v1983_v20  ;;  %2039 = vmatprep.mubr.msk.f32.mxu1 %vm456_vm1, %v1248_v16  ;;  %v1251_v32 = vmax.f32 %v1235_v19, 0.0 }
 0x37c   : > { %v1056_v26 = vpop.f32.mrf.mxu1  ;;  %2040 = vmatmul.mubr.msk.f32.gmra.mxu1 %vm456_vm1, %v1249_v17 }
 0x37d   : > { %v1250_v28 = vmax.f32 %v1234_v22, 0.0  ;;  %v1202_v31 = vadd.f32 %v1201_v3, %v1056_v26  ;;  %v1237_v34 = vadd.f32 %v2686_v62, %v1207_v23 }
 0x37e   : > { %v1986_v35 = vpop.f32.mrf.mxu1 }
 0x37f   : > { %v1236_v37 = vadd.f32 %v2686_v62, %v1202_v31  ;;  %v1217_v18 = vadd.f32 %v2018_v25, %v1986_v35  ;;  %2042 = vmatprep.mubr.msk.f32.mxu1 %vm456_vm1, %v1250_v28  ;;  %v1253_v8 = vmax.f32 %v1237_v34, 0.0 }
 0x380   : > { %v1066_v44 = vpop.f32.mrf.mxu1  ;;  %2043 = vmatmul.mubr.msk.f32.gmra.mxu1 %vm456_vm1, %v1251_v32 }
 0x381   : > { %v1252_v45 = vmax.f32 %v1236_v37, 0.0  ;;  %v1212_v49 = vadd.f32 %v1211_v40, %v1066_v44  ;;  %v1239_v24 = vadd.f32 %v2686_v62, %v1217_v18 }
 0x383   : > { %v1238_v53 = vadd.f32 %v2686_v62, %v1212_v49  ;;  %2045 = vmatprep.mubr.msk.f32.mxu1 %vm456_vm1, %v1252_v45  ;;  %v1255_v60 = vmax.f32 %v1239_v24, 0.0 }
 0x384   : > { %2046 = vmatmul.mubr.msk.f32.gmra.mxu1 %vm456_vm1, %v1253_v8 }
 0x385   : > { %v1254_v57 = vmax.f32 %v1238_v53, 0.0 }
 0x387   : > { %2048 = vmatprep.mubr.msk.f32.mxu1 %vm456_vm1, %v1254_v57 }
 0x388   : > { %2049 = vmatmul.mubr.msk.f32.gmra.mxu1 %vm456_vm1, %v1255_v60 }
 0x42b   : > { %v2029_v1 = vpop.f32.mrf.mxu1 }
 0x42c   : > { %v1380_v62 = vadd.f32 %v2029_v1, %v2724_v0 }
 0x42d   : > { %v1374_v4 = vpop.f32.mrf.mxu1 }
 0x42e   : > { %v1454_v5 = vadd.f32 %v1380_v62, %v2594_v29  ;;  %v1375_v7 = vadd.f32 %v2724_v0, %v1374_v4 }
 0x42f   : > { %v2032_v9 = vpop.f32.mrf.mxu1 }
 0x430   : > { %1470 = vst [vmem:[%s2731_s4 + $0x8] sm:$0xff] %v1454_v5  ;;  %v1453_v10 = vadd.f32 %v1375_v7, %v2589_v13  ;;  %v1390_v33 = vadd.f32 %v2032_v9, %v2724_v0 }
 0x431   : > { %v1384_v38 = vpop.f32.mrf.mxu1 }
 0x432   : > { %1469 = vst [vmem:[%s2731_s4] sm:$0xff] %v1453_v10  ;;  %v1456_v29 = vadd.f32 %v1390_v33, %v2608_v48  ;;  %v1385_v42 = vadd.f32 %v2724_v0, %v1384_v38 }
 0x433   : > { %v2035_v41 = vpop.f32.mrf.mxu1 }
 0x434   : > { %1472 = vst [vmem:[%s2731_s4 + $0x18] sm:$0xff] %v1456_v29  ;;  %v1455_v46 = vadd.f32 %v1385_v42, %v2602_v15  ;;  %v1400_v61 = vadd.f32 %v2035_v41, %v2724_v0 }
 0x435   : > { %v1394_v12 = vpop.f32.mrf.mxu1 }
 0x436   : > { %1471 = vst [vmem:[%s2731_s4 + $0x10] sm:$0xff] %v1455_v46  ;;  %v1458_v13 = vadd.f32 %v1400_v61, %v2620_v21  ;;  %v1395_v51 = vadd.f32 %v2724_v0, %v1394_v12 }
 0x437   : > { %v2038_v54 = vpop.f32.mrf.mxu1 }
 0x438   : > { %1474 = vst [vmem:[%s2731_s4 + $0x28] sm:$0xff] %v1458_v13  ;;  %v1457_v48 = vadd.f32 %v1395_v51, %v2614_v56  ;;  %v1410_v55 = vadd.f32 %v2038_v54, %v2724_v0 }
 0x439   : > { %v1404_v59 = vpop.f32.mrf.mxu1 }
 0x43a   : > { %1473 = vst [vmem:[%s2731_s4 + $0x20] sm:$0xff] %v1457_v48  ;;  %v1460_v15 = vadd.f32 %v1410_v55, %v2632_v27  ;;  %v1405_v63 = vadd.f32 %v2724_v0, %v1404_v59 }
 0x43c   : > { %1476 = vst [vmem:[%s2731_s4 + $0x38] sm:$0xff] %v1460_v15  ;;  %v1459_v2 = vadd.f32 %v1405_v63, %v2626_v30  ;;  %v2041_v21 = vpop.f32.mrf.mxu1 }
 0x43d   : > { %v1420_v3 = vadd.f32 %v2041_v21, %v2724_v0 }
 0x43e   : > { %1475 = vst [vmem:[%s2731_s4 + $0x30] sm:$0xff] %v1459_v2  ;;  %v1414_v14 = vpop.f32.mrf.mxu1 }
 0x43f   : > { %v1462_v56 = vadd.f32 %v1420_v3, %v2644_v36  ;;  %v1415_v16 = vadd.f32 %v2724_v0, %v1414_v14 }
 0x440   : > { %v2044_v58 = vpop.f32.mrf.mxu1 }
 0x441   : > { %1478 = vst [vmem:[%s2731_s4 + $0x48] sm:$0xff] %v1462_v56  ;;  %v1461_v27 = vadd.f32 %v1415_v16, %v2638_v11  ;;  %v1430_v17 = vadd.f32 %v2044_v58, %v2724_v0 }
 0x442   : > { %v1424_v19 = vpop.f32.mrf.mxu1 }
 0x443   : > { %1477 = vst [vmem:[%s2731_s4 + $0x40] sm:$0xff] %v1461_v27  ;;  %v1464_v30 = vadd.f32 %v1430_v17, %v2656_v52  ;;  %v1425_v20 = vadd.f32 %v2724_v0, %v1424_v19 }
 0x444   : > { %v2047_v22 = vpop.f32.mrf.mxu1 }
 0x445   : > { %1480 = vst [vmem:[%s2731_s4 + $0x58] sm:$0xff] %v1464_v30  ;;  %v1463_v36 = vadd.f32 %v1425_v20, %v2650_v39  ;;  %v1440_v23 = vadd.f32 %v2047_v22, %v2724_v0 }
 0x446   : > { %v1434_v25 = vpop.f32.mrf.mxu1 }
 0x447   : > { %1479 = vst [vmem:[%s2731_s4 + $0x50] sm:$0xff] %v1463_v36  ;;  %v1466_v11 = vadd.f32 %v1440_v23, %v2668_v6  ;;  %v1435_v26 = vadd.f32 %v2724_v0, %v1434_v25 }
 0x448   : > { %v2050_v28 = vpop.f32.mrf.mxu1 }
 0x449   : > { %1482 = vst [vmem:[%s2731_s4 + $0x68] sm:$0xff] %v1466_v11  ;;  %v1465_v52 = vadd.f32 %v1435_v26, %v2662_v43  ;;  %v1450_v31 = vadd.f32 %v2050_v28, %v2724_v0 }
 0x44a   : > { %v1444_v39 = vpop.f32.mrf.mxu1 }
 0x44b   : > { %1481 = vst [vmem:[%s2731_s4 + $0x60] sm:$0xff] %v1465_v52  ;;  %v1468_v32 = vadd.f32 %v1450_v31, %v2680_v47  ;;  %v1445_v34 = vadd.f32 %v2724_v0, %v1444_v39 }
 0x44d   : > { %1484 = vst [vmem:[%s2731_s4 + $0x78] sm:$0xff] %v1468_v32  ;;  %v1467_v43 = vadd.f32 %v1445_v34, %v2674_v50 }
 0x44f   : > { %1483 = vst [vmem:[%s2731_s4 + $0x70] sm:$0xff] %v1467_v43 }
 0x450   : > { %2208 = shalt.err (!%p2205_p0)
}
 0x451   : > { %s2209_s20 = scalar_lea.hbm %s2780_s9, 2048  ;;  %s2213_s26 = scalar_lea.hbm %s2832_s3, 4096 }
 0x452   : > { %p2210_p1 = scmp.ne.s32.totalorder %s2780_s9, %s2209_s20  ;;  %p2214_p4 = scmp.lt.s32.totalorder %s2780_s9, %s2832_s3 }
 0x453   : > { %p2215_p7 = scmp.lt.s32.totalorder %s2213_s26, %s2209_s20 }
 0x454   : > { %p2211_p2 = pnand %p2210_p1, %p2325_p5 }
 0x455   : > { %p2216_p8 = por %p2215_p7, %p2214_p4 }
 0x456   : > { %p2212_p3 = pneg %p2211_p2 }
 0x458   : > { %p2217_p6 = pnand %p2216_p8, %p2212_p3 }
 0x45a   : > { %2220 = shalt.err (!%p2217_p6)
}
 0x45b   : > { %s2265_s29 = smov 128   ;;  %s2266_s30 = smov 8  }
 0x45c   : > { %2055 = dma.vmem_to_hbm [thread:$0]  (%p2325_p5), %s2782_s6, 2048, %s2780_s9, %s2789_s16, %s2265_s29, %s2265_s29, %s2266_s30  }
 0x45d PF: > { %p2067_p9 = scmp.ge.s32.totalorder %s2259_s15, 2  ;;  %s1514_s4 = sand.u32 1, %s2247_s12  }
 0x45e   : > { %p2836_p10 = scmp.ne.s32.totalorder %s2834_s23, 0  ;;  %s1515_s5 = scalar_lea.sflag [#allocation4], %s1514_s4 }
 0x460   : > { %p2062_p11 = pnand %p2067_p9, %p2836_p10 }
 0x462   : > { %p2063_p12 = pneg %p2062_p11 }
 0x464   : > { %2242 = dma.done.wait (%p2063_p12), %s1515_s5, 2048  }
 0x465   : > { %2244 = vsyncadd (%p2063_p12), %s1515_s5, 4294965248  ;;  %p14_p13 = scmp.ge.s32.totalorder %s2312_s18, 4   ;;  %s2837_s12 = smov %s2251_s13 }
 0x466   : > { %s2838_s13 = smov %s2255_s14  ;;  %s2839_s14 = smov %s2323_s21 }
 0x467   : > { %s2840_s15 = smov %s2312_s18  ;;  %16 = sbr.rel (!%p14_p13) target bundleno = 4 (0x4), region = 72 }
 0x46c   :  { %1520 = vsyncpa [#allocation3], 1 }
 0x46d   :  { %1522 = vsyncpa [#allocation3 + $0x1], 1 }
 0x46e   :  { %1523 = vsyncpa [#allocation4], 1 }
 0x46f   :  { %1525 = vsyncpa [#allocation4 + $0x1], 1 }

</bundles_post_ra>
